<compile_context>
chip_gen: v7x
topology: tpu7x:2x2x1
jax: 0.10.0
libtpu: 0.0.40
codegen_flags: <defaults>
</compile_context>

<pallas_src>
import functools

import jax
import jax.numpy as jnp
from jax.experimental import pallas as pl
from jax.experimental.pallas import tpu as pltpu


def _round_up(x, m):
    return ((x + m - 1) // m) * m


def _combined_loss_kernel(x_ref, t_ref, w_ref,            # inputs  (C,T)(1,T)(1,T)
                          num_ref, den_ref, ce_ref,       # outputs (C,1)(C,1)(1,1)
                          num_acc, den_acc, ce_acc,       # scratch (C,T)(C,T)(1,T)
                          *, hw, tile):
    i = pl.program_id(1)
    n_tiles = pl.num_programs(1)

    @pl.when(i == 0)
    def _():
        num_acc[...] = jnp.zeros_like(num_acc)
        den_acc[...] = jnp.zeros_like(den_acc)
        ce_acc[...] = jnp.zeros_like(ce_acc)

    x = x_ref[...].astype(jnp.float32)          # (C, T) logits
    t = t_ref[...]                              # (1, T) int32 (padding pixels = C)
    w = w_ref[...].astype(jnp.float32)          # (1, T)  (padding pixels = 0)

    c = x.shape[0]

    # valid-pixel mask: padding only at the tail of each image's pixel axis
    lane = jax.lax.broadcasted_iota(jnp.int32, (1, tile), 1)
    mask = (lane < (hw - i * tile)).astype(jnp.float32)        # (1, T)

    # numerically-stable softmax over the channel (sublane) axis
    m = jnp.max(x, axis=0, keepdims=True)                      # (1, T)
    e = jnp.exp(x - m)                                         # (C, T)
    s = jnp.sum(e, axis=0, keepdims=True)                      # (1, T)
    inv_s = pl.reciprocal(s, approx=True) * mask               # EUP slot; masked
    soft = e * inv_s                                           # zero at padding

    # one-hot(target) over channels; padded targets (== C) give all-zero cols
    chan = jax.lax.broadcasted_iota(jnp.int32, (c, tile), 0)
    onehot = (chan == t).astype(jnp.float32)                   # (C, T)

    # dice partials, elementwise accumulate (lane reduce deferred to the end)
    num_acc[...] += soft * onehot
    den_acc[...] += soft + onehot

    # weighted cross-entropy partial from the selected logit
    x_sel = jnp.sum(x * onehot, axis=0, keepdims=True)         # (1, T)
    ce_px = (m + jnp.log(s)) - x_sel                           # -log_softmax[t]
    ce_acc[...] += ce_px * w                                   # w == 0 on padding

    @pl.when(i == n_tiles - 1)
    def _():
        num_ref[...] = jnp.sum(num_acc[...], axis=1, keepdims=True)   # (C, 1)
        den_ref[...] = jnp.sum(den_acc[...], axis=1, keepdims=True)   # (C, 1)
        ce_ref[...] = jnp.sum(ce_acc[...], axis=1, keepdims=True)     # (1, 1)


def combined_loss(inputx, target, weight=None, weight_dice=1.0, weight_ce=1.0,
                  target_block_bytes=512 * 1024):
    """inputx: (N, C, H, W) float; target: (N, H, W) int; weight: (N, H, W) float."""
    n, c, h, w_sp = inputx.shape
    hw = h * w_sp
    p = n * hw

    if weight is None:
        weight = jnp.ones((n, h, w_sp), dtype=jnp.float32)

    # pixel tile: lane-dense (multiple of 128), ~0.5 MiB of logits per block
    itemsize = jnp.dtype(inputx.dtype).itemsize
    tile = max(128, (target_block_bytes // (c * itemsize)) // 128 * 128)
    tile = min(tile, _round_up(hw, 128))
    hw_pad = _round_up(hw, tile)
    n_tiles = hw_pad // tile
    pad = hw_pad - hw

    # NCHW -> (N, C, HW): pure reshape, no transpose, no extra HBM pass
    x3d = inputx.reshape(n, c, hw)
    t3d = target.reshape(n, 1, hw).astype(jnp.int32)
    w3d = weight.reshape(n, 1, hw).astype(jnp.float32)
    if pad:
        x3d = jnp.pad(x3d, ((0, 0), (0, 0), (0, pad)))
        # out-of-range class for padding -> one-hot column is all zeros
        t3d = jnp.pad(t3d, ((0, 0), (0, 0), (0, pad)), constant_values=c)
        w3d = jnp.pad(w3d, ((0, 0), (0, 0), (0, pad)))

    kernel = functools.partial(_combined_loss_kernel, hw=hw, tile=tile)

    num_out, den_out, ce_out = pl.pallas_call(
        kernel,
        out_shape=(
            jax.ShapeDtypeStruct((n, c, 1), jnp.float32),
            jax.ShapeDtypeStruct((n, c, 1), jnp.float32),
            jax.ShapeDtypeStruct((n, 1, 1), jnp.float32),
        ),
        grid_spec=pltpu.PrefetchScalarGridSpec(
            num_scalar_prefetch=0,
            grid=(n, n_tiles),
            in_specs=[
                pl.BlockSpec((None, c, tile), lambda b, i: (b, 0, i)),
                pl.BlockSpec((None, 1, tile), lambda b, i: (b, 0, i)),
                pl.BlockSpec((None, 1, tile), lambda b, i: (b, 0, i)),
            ],
            out_specs=[
                pl.BlockSpec((None, c, 1), lambda b, i: (b, 0, 0)),
                pl.BlockSpec((None, c, 1), lambda b, i: (b, 0, 0)),
                pl.BlockSpec((None, 1, 1), lambda b, i: (b, 0, 0)),
            ],
            scratch_shapes=[
                pltpu.VMEM((c, tile), jnp.float32),   # dice numerator partials
                pltpu.VMEM((c, tile), jnp.float32),   # dice denominator partials
                pltpu.VMEM((1, tile), jnp.float32),   # weighted CE partials
            ],
        ),
        compiler_params=pltpu.CompilerParams(
            dimension_semantics=("parallel", "arbitrary")),
    )(x3d, t3d, w3d)

    eps = 0.001
    num = jnp.sum(num_out[:, :, 0], axis=0)                 # (C,)
    den = jnp.sum(den_out[:, :, 0], axis=0)                 # (C,)
    loss_per_channel = 1.0 - (2.0 * num) / (den + eps)
    dice_val = jnp.sum(loss_per_channel) / c                # DiceLoss; mean() is identity
    ce_val = jnp.sum(ce_out) / p                            # mean over N*H*W of CE*weight
    total_loss = weight_dice * dice_val + weight_ce * ce_val
    return total_loss, dice_val, ce_val


def _reference(inputx, target, weight, weight_dice=1.0, weight_ce=1.0):
    """Pure-JAX reference mirroring the PyTorch CombinedLoss.forward."""
    n, c, h, w_sp = inputx.shape
    x = inputx.astype(jnp.float32)
    soft = jax.nn.softmax(x, axis=1)
    onehot = jax.nn.one_hot(target, c, axis=1, dtype=jnp.float32)   # (N,C,H,W)
    eps = 0.001
    num = 2.0 * jnp.sum(soft * onehot, axis=(0, 2, 3))
    den = jnp.sum(soft + onehot, axis=(0, 2, 3)) + eps
    dice_val = jnp.sum(1.0 - num / den) / c
    logsoft = jax.nn.log_softmax(x, axis=1)
    ce_px = -jnp.sum(logsoft * onehot, axis=1)                      # (N,H,W)
    ce_val = jnp.mean(ce_px * weight)
    return weight_dice * dice_val + weight_ce * ce_val, dice_val, ce_val


if __name__ == "__main__":
    key = jax.random.PRNGKey(0)
    k1, k2, k3 = jax.random.split(key, 3)

    N, C, H, W = 2, 4, 16, 16
    inputx = jax.random.normal(k1, (N, C, H, W), dtype=jnp.float32)
    target = jax.random.randint(k2, (N, H, W), 0, C, dtype=jnp.int32)
    weight = jax.random.uniform(k3, (N, H, W), dtype=jnp.float32)

    total_loss, dice_val, ce_val = combined_loss(
        inputx, target, weight, weight_dice=1.0, weight_ce=1.0)
    jax.block_until_ready((total_loss, dice_val, ce_val))

    ref_total, ref_dice, ref_ce = _reference(inputx, target, weight, 1.0, 1.0)
    assert jnp.allclose(total_loss, ref_total, rtol=2e-3, atol=2e-3)
    assert jnp.allclose(dice_val, ref_dice, rtol=2e-3, atol=2e-3)
    assert jnp.allclose(ce_val, ref_ce, rtol=2e-3, atol=2e-3)

    print("KERNEL_OK")
</pallas_src>

<mosaic_0001>
module attributes {stable_mosaic.version = 11 : i64} {
  func.func @_combined_loss_kernel(%arg0: i32, %arg1: i32, %arg2: memref<1x4x256xf32, #tpu.memory_space<vmem>>, %arg3: memref<1x1x256xi32, #tpu.memory_space<vmem>>, %arg4: memref<1x1x256xf32, #tpu.memory_space<vmem>>, %arg5: memref<1x4x1xf32, #tpu.memory_space<vmem>>, %arg6: memref<1x4x1xf32, #tpu.memory_space<vmem>>, %arg7: memref<1x1x1xf32, #tpu.memory_space<vmem>>, %arg8: memref<4x256xf32, #tpu.memory_space<vmem>>, %arg9: memref<4x256xf32, #tpu.memory_space<vmem>>, %arg10: memref<1x256xf32, #tpu.memory_space<vmem>>) attributes {dimension_semantics = [#tpu.dimension_semantics<parallel>, #tpu.dimension_semantics<arbitrary>], iteration_bounds = array<i64: 2, 1>, scalar_prefetch = 0 : i64, scratch_operands = 3 : i64, tpu.core_type = #tpu.core_type<tc>, window_params = [{transform_indices = @transform_0, window_bounds = array<i64: 1, 4, 256>}, {transform_indices = @transform_1, window_bounds = array<i64: 1, 1, 256>}, {transform_indices = @transform_2, window_bounds = array<i64: 1, 1, 256>}, {transform_indices = @transform_3, window_bounds = array<i64: 1, 4, 1>}, {transform_indices = @transform_4, window_bounds = array<i64: 1, 4, 1>}, {transform_indices = @transform_5, window_bounds = array<i64: 1, 1, 1>}]} {
    %c0_i32 = arith.constant 0 : i32
    %0 = arith.cmpi eq, %arg1, %c0_i32 : i32
    %1 = arith.extui %0 : i1 to i32
    %c0_i32_0 = arith.constant 0 : i32
    %2 = arith.cmpi ne, %1, %c0_i32_0 : i32
    scf.if %2 {
      %cst_26 = arith.constant 0.000000e+00 : f32
      %53 = vector.broadcast %cst_26 : f32 to vector<4x256xf32>
      %c0_27 = arith.constant 0 : index
      %c0_28 = arith.constant 0 : index
      %54 = vector.load %arg8[%c0_27, %c0_28] : memref<4x256xf32, #tpu.memory_space<vmem>>, vector<4x256xf32>
      tpu.vector_store %arg8[%c0_27, %c0_28], %53 {strides = array<i32>} : memref<4x256xf32, #tpu.memory_space<vmem>>, vector<4x256xf32>,
      %cst_29 = arith.constant 0.000000e+00 : f32
      %55 = vector.broadcast %cst_29 : f32 to vector<4x256xf32>
      %c0_30 = arith.constant 0 : index
      %c0_31 = arith.constant 0 : index
      %56 = vector.load %arg9[%c0_30, %c0_31] : memref<4x256xf32, #tpu.memory_space<vmem>>, vector<4x256xf32>
      tpu.vector_store %arg9[%c0_30, %c0_31], %55 {strides = array<i32>} : memref<4x256xf32, #tpu.memory_space<vmem>>, vector<4x256xf32>,
      %cst_32 = arith.constant 0.000000e+00 : f32
      %57 = vector.broadcast %cst_32 : f32 to vector<1x256xf32>
      %c0_33 = arith.constant 0 : index
      %c0_34 = arith.constant 0 : index
      %58 = vector.load %arg10[%c0_33, %c0_34] : memref<1x256xf32, #tpu.memory_space<vmem>>, vector<1x256xf32>
      tpu.vector_store %arg10[%c0_33, %c0_34], %57 {strides = array<i32>} : memref<1x256xf32, #tpu.memory_space<vmem>>, vector<1x256xf32>,
    } else {
    }
    %c0 = arith.constant 0 : index
    %c0_1 = arith.constant 0 : index
    %c0_2 = arith.constant 0 : index
    %3 = vector.load %arg2[%c0, %c0_1, %c0_2] : memref<1x4x256xf32, #tpu.memory_space<vmem>>, vector<1x4x256xf32>
    %4 = vector.shape_cast %3 : vector<1x4x256xf32> to vector<4x256xf32>
    %c0_3 = arith.constant 0 : index
    %c0_4 = arith.constant 0 : index
    %c0_5 = arith.constant 0 : index
    %5 = vector.load %arg3[%c0_3, %c0_4, %c0_5] : memref<1x1x256xi32, #tpu.memory_space<vmem>>, vector<1x1x256xi32>
    %6 = vector.shape_cast %5 : vector<1x1x256xi32> to vector<1x256xi32>
    %c0_6 = arith.constant 0 : index
    %c0_7 = arith.constant 0 : index
    %c0_8 = arith.constant 0 : index
    %7 = vector.load %arg4[%c0_6, %c0_7, %c0_8] : memref<1x1x256xf32, #tpu.memory_space<vmem>>, vector<1x1x256xf32>
    %8 = vector.shape_cast %7 : vector<1x1x256xf32> to vector<1x256xf32>
    %9 = tpu.iota {dimensions = array<i32: 1>} : vector<1x256xi32>
    %c256_i32 = arith.constant 256 : i32
    %10 = arith.muli %arg1, %c256_i32 : i32
    %c256_i32_9 = arith.constant 256 : i32
    %11 = arith.subi %c256_i32_9, %10 : i32
    %12 = vector.broadcast %11 : i32 to vector<1x256xi32>
    %13 = arith.cmpi slt, %9, %12 : vector<1x256xi32>
    %14 = arith.extui %13 : vector<1x256xi1> to vector<1x256xi32>
    %15 = arith.sitofp %14 : vector<1x256xi32> to vector<1x256xf32>
    %cst = arith.constant dense<0xFF800000> : vector<256xf32>
    %16 = vector.multi_reduction <maximumf>, %4, %cst [0] : vector<4x256xf32> to vector<256xf32>
    %17 = vector.shape_cast %16 : vector<256xf32> to vector<1x256xf32>
    %18 = vector.broadcast %17 : vector<1x256xf32> to vector<4x256xf32>
    %19 = arith.subf %4, %18 : vector<4x256xf32>
    %20 = math.exp %19 : vector<4x256xf32>
    %cst_10 = arith.constant dense<0.000000e+00> : vector<256xf32>
    %21 = vector.multi_reduction <add>, %20, %cst_10 [0] : vector<4x256xf32> to vector<256xf32>
    %22 = vector.shape_cast %21 : vector<256xf32> to vector<1x256xf32>
    %23 = tpu.reciprocal %22 {approx = true} : vector<1x256xf32> -> vector<1x256xf32>
    %24 = arith.mulf %23, %15 : vector<1x256xf32>
    %25 = vector.broadcast %24 : vector<1x256xf32> to vector<4x256xf32>
    %26 = arith.mulf %20, %25 : vector<4x256xf32>
    %27 = tpu.iota {dimensions = array<i32: 0>} : vector<4x256xi32>
    %28 = vector.broadcast %6 : vector<1x256xi32> to vector<4x256xi32>
    %29 = arith.cmpi eq, %27, %28 : vector<4x256xi32>
    %30 = arith.extui %29 : vector<4x256xi1> to vector<4x256xi32>
    %31 = arith.sitofp %30 : vector<4x256xi32> to vector<4x256xf32>
    %c0_11 = arith.constant 0 : index
    %c0_12 = arith.constant 0 : index
    %32 = vector.load %arg8[%c0_11, %c0_12] : memref<4x256xf32, #tpu.memory_space<vmem>>, vector<4x256xf32>
    %33 = arith.mulf %26, %31 : vector<4x256xf32>
    %34 = arith.addf %32, %33 : vector<4x256xf32>
    %c0_13 = arith.constant 0 : index
    %c0_14 = arith.constant 0 : index
    %35 = vector.load %arg8[%c0_13, %c0_14] : memref<4x256xf32, #tpu.memory_space<vmem>>, vector<4x256xf32>
    tpu.vector_store %arg8[%c0_13, %c0_14], %34 {strides = array<i32>} : memref<4x256xf32, #tpu.memory_space<vmem>>, vector<4x256xf32>,
    %c0_15 = arith.constant 0 : index
    %c0_16 = arith.constant 0 : index
    %36 = vector.load %arg9[%c0_15, %c0_16] : memref<4x256xf32, #tpu.memory_space<vmem>>, vector<4x256xf32>
    %37 = arith.addf %26, %31 : vector<4x256xf32>
    %38 = arith.addf %36, %37 : vector<4x256xf32>
    %c0_17 = arith.constant 0 : index
    %c0_18 = arith.constant 0 : index
    %39 = vector.load %arg9[%c0_17, %c0_18] : memref<4x256xf32, #tpu.memory_space<vmem>>, vector<4x256xf32>
    tpu.vector_store %arg9[%c0_17, %c0_18], %38 {strides = array<i32>} : memref<4x256xf32, #tpu.memory_space<vmem>>, vector<4x256xf32>,
    %40 = arith.mulf %4, %31 : vector<4x256xf32>
    %cst_19 = arith.constant dense<0.000000e+00> : vector<256xf32>
    %41 = vector.multi_reduction <add>, %40, %cst_19 [0] : vector<4x256xf32> to vector<256xf32>
    %42 = vector.shape_cast %41 : vector<256xf32> to vector<1x256xf32>
    %43 = math.log %22 : vector<1x256xf32>
    %44 = arith.addf %17, %43 : vector<1x256xf32>
    %45 = arith.subf %44, %42 : vector<1x256xf32>
    %c0_20 = arith.constant 0 : index
    %c0_21 = arith.constant 0 : index
    %46 = vector.load %arg10[%c0_20, %c0_21] : memref<1x256xf32, #tpu.memory_space<vmem>>, vector<1x256xf32>
    %47 = arith.mulf %45, %8 : vector<1x256xf32>
    %48 = arith.addf %46, %47 : vector<1x256xf32>
    %c0_22 = arith.constant 0 : index
    %c0_23 = arith.constant 0 : index
    %49 = vector.load %arg10[%c0_22, %c0_23] : memref<1x256xf32, #tpu.memory_space<vmem>>, vector<1x256xf32>
    tpu.vector_store %arg10[%c0_22, %c0_23], %48 {strides = array<i32>} : memref<1x256xf32, #tpu.memory_space<vmem>>, vector<1x256xf32>,
    %c0_i32_24 = arith.constant 0 : i32
    %50 = arith.cmpi eq, %arg1, %c0_i32_24 : i32
    %51 = arith.extui %50 : i1 to i32
    %c0_i32_25 = arith.constant 0 : i32
    %52 = arith.cmpi ne, %51, %c0_i32_25 : i32
    scf.if %52 {
      %c0_26 = arith.constant 0 : index
      %c0_27 = arith.constant 0 : index
      %53 = vector.load %arg8[%c0_26, %c0_27] : memref<4x256xf32, #tpu.memory_space<vmem>>, vector<4x256xf32>
      %cst_28 = arith.constant dense<0.000000e+00> : vector<4xf32>
      %54 = vector.multi_reduction <add>, %53, %cst_28 [1] : vector<4x256xf32> to vector<4xf32>
      %55 = vector.shape_cast %54 : vector<4xf32> to vector<4x1xf32>
      %c0_29 = arith.constant 0 : index
      %c0_30 = arith.constant 0 : index
      %c0_31 = arith.constant 0 : index
      %56 = vector.load %arg5[%c0_29, %c0_30, %c0_31] : memref<1x4x1xf32, #tpu.memory_space<vmem>>, vector<1x4x1xf32>
      %57 = vector.shape_cast %56 : vector<1x4x1xf32> to vector<4x1xf32>
      %58 = vector.shape_cast %55 : vector<4x1xf32> to vector<1x4x1xf32>
      tpu.vector_store %arg5[%c0_29, %c0_30, %c0_31], %58 {strides = array<i32>} : memref<1x4x1xf32, #tpu.memory_space<vmem>>, vector<1x4x1xf32>,
      %c0_32 = arith.constant 0 : index
      %c0_33 = arith.constant 0 : index
      %59 = vector.load %arg9[%c0_32, %c0_33] : memref<4x256xf32, #tpu.memory_space<vmem>>, vector<4x256xf32>
      %cst_34 = arith.constant dense<0.000000e+00> : vector<4xf32>
      %60 = vector.multi_reduction <add>, %59, %cst_34 [1] : vector<4x256xf32> to vector<4xf32>
      %61 = vector.shape_cast %60 : vector<4xf32> to vector<4x1xf32>
      %c0_35 = arith.constant 0 : index
      %c0_36 = arith.constant 0 : index
      %c0_37 = arith.constant 0 : index
      %62 = vector.load %arg6[%c0_35, %c0_36, %c0_37] : memref<1x4x1xf32, #tpu.memory_space<vmem>>, vector<1x4x1xf32>
      %63 = vector.shape_cast %62 : vector<1x4x1xf32> to vector<4x1xf32>
      %64 = vector.shape_cast %61 : vector<4x1xf32> to vector<1x4x1xf32>
      tpu.vector_store %arg6[%c0_35, %c0_36, %c0_37], %64 {strides = array<i32>} : memref<1x4x1xf32, #tpu.memory_space<vmem>>, vector<1x4x1xf32>,
      %c0_38 = arith.constant 0 : index
      %c0_39 = arith.constant 0 : index
      %65 = vector.load %arg10[%c0_38, %c0_39] : memref<1x256xf32, #tpu.memory_space<vmem>>, vector<1x256xf32>
      %cst_40 = arith.constant dense<0.000000e+00> : vector<1xf32>
      %66 = vector.multi_reduction <add>, %65, %cst_40 [1] : vector<1x256xf32> to vector<1xf32>
      %67 = vector.shape_cast %66 : vector<1xf32> to vector<1x1xf32>
      %c0_41 = arith.constant 0 : index
      %c0_42 = arith.constant 0 : index
      %c0_43 = arith.constant 0 : index
      %68 = vector.load %arg7[%c0_41, %c0_42, %c0_43] : memref<1x1x1xf32, #tpu.memory_space<vmem>>, vector<1x1x1xf32>
      %69 = vector.shape_cast %68 : vector<1x1x1xf32> to vector<1x1xf32>
      %70 = vector.shape_cast %67 : vector<1x1xf32> to vector<1x1x1xf32>
      tpu.vector_store %arg7[%c0_41, %c0_42, %c0_43], %70 {strides = array<i32>} : memref<1x1x1xf32, #tpu.memory_space<vmem>>, vector<1x1x1xf32>,
    } else {
    }
    return
  }
  func.func @transform_0(%arg0: i32, %arg1: i32) -> (i32, i32, i32) {
    %c0_i32 = arith.constant 0 : i32
    %c0_i32_0 = arith.constant 0 : i32
    return %arg0, %c0_i32, %arg1 : i32, i32, i32
  }
  func.func @transform_1(%arg0: i32, %arg1: i32) -> (i32, i32, i32) {
    %c0_i32 = arith.constant 0 : i32
    %c0_i32_0 = arith.constant 0 : i32
    return %arg0, %c0_i32, %arg1 : i32, i32, i32
  }
  func.func @transform_2(%arg0: i32, %arg1: i32) -> (i32, i32, i32) {
    %c0_i32 = arith.constant 0 : i32
    %c0_i32_0 = arith.constant 0 : i32
    return %arg0, %c0_i32, %arg1 : i32, i32, i32
  }
  func.func @transform_3(%arg0: i32, %arg1: i32) -> (i32, i32, i32) {
    %c0_i32 = arith.constant 0 : i32
    %c0_i32_0 = arith.constant 0 : i32
    %c0_i32_1 = arith.constant 0 : i32
    return %arg0, %c0_i32, %c0_i32_0 : i32, i32, i32
  }
  func.func @transform_4(%arg0: i32, %arg1: i32) -> (i32, i32, i32) {
    %c0_i32 = arith.constant 0 : i32
    %c0_i32_0 = arith.constant 0 : i32
    %c0_i32_1 = arith.constant 0 : i32
    return %arg0, %c0_i32, %c0_i32_0 : i32, i32, i32
  }
  func.func @transform_5(%arg0: i32, %arg1: i32) -> (i32, i32, i32) {
    %c0_i32 = arith.constant 0 : i32
    %c0_i32_0 = arith.constant 0 : i32
    %c0_i32_1 = arith.constant 0 : i32
    return %arg0, %c0_i32, %c0_i32_0 : i32, i32, i32
  }
}

</mosaic_0001>

<bundles_post_ra>
// kernel: tpu_custom_call.1
= control target key start
LH: loop header
LB: loop body
LE: loop exit
PB: predicated region body
PF: predicated region fallthrough
CT: control target
= control target key end

     0   :  { %11 = vsyncpa [#allocation6], 0  ;;  %s1207_s0 = inlined_call_operand.hbm [shape: f32[2,4,256], index: 0, kind: input, shape index: {}]   ;;  %s1208_s1 = inlined_call_operand.hbm [shape: s32[2,1,256], index: 1, kind: input, shape index: {}]   ;;  %s1209_s2 = inlined_call_operand.vmem [shape: f32[2,1,256], index: 2, kind: input, shape index: {}]   ;;  %s1210_s3 = inlined_call_operand.vmem [shape: f32[2,4,1], index: 3, kind: output, shape index: {0}]   ;;  %s1211_s4 = inlined_call_operand.vmem [shape: f32[2,4,1], index: 4, kind: output, shape index: {1}]   ;;  %s1212_s5 = inlined_call_operand.vmem [shape: f32[2,1,1], index: 5, kind: output, shape index: {2}]  }
   0x1   :  { %13 = vsyncpa [#allocation6 + $0x1], 0 }
   0x2   :  { %14 = vsyncpa [#allocation8], 0 }
   0x3   :  { %16 = vsyncpa [#allocation8 + $0x1], 0  ;;  %s984_s18 = smov 0   ;;  %s986_s19 = smov 0  }
   0x4   :  { %s988_s20 = smov 0   ;;  %s990_s21 = smov 0  }
   0x5   :  { %s992_s22 = smov 0   ;;  %s994_s23 = smov 0  }
   0x6 LB: > { %s739_s24 = sadd.s32 4294967295, %s948_s23   ;;  %s34_s25 = sadd.s32 1, %s944_s22  ;;  %s948_s23 = sphi %s994_s23, %s22_s23   ;;  %s944_s22 = sphi %s992_s22, %s1228_s22   ;;  %s940_s21 = sphi %s990_s21, %s1227_s21   ;;  %s936_s20 = sphi %s988_s20, %s1226_s20   ;;  %s932_s19 = sphi %s986_s19, %s1225_s19   ;;  %s928_s18 = sphi %s984_s18, %s1224_s18  }
   0x7   : > { %p36_p0 = scmp.ge.s32.totalorder %s34_s25, 2  ;;  %s43_s26 = sadd.s32 1, %s936_s20 }
   0x8   : > { %p50_p1 = scmp.ne.s32.totalorder %s936_s20, %s932_s19  ;;  %p51_p2 = scmp.eq.s32.totalorder %s948_s23, 0 }
   0x9   : > { %s1230_s25 = smov (%p36_p0, %s34_s25), 0  ;;  %p56_p4 = scmp.ne.s32.totalorder %s932_s19, %s928_s18 }
   0xa   : > { %p1020_p3 = por %p51_p2, %p50_p1  ;;  %s38_s28 = ssub.s32 %s944_s22, %s1230_s25 }
   0xb   : > { %p57_p5 = scmp.eq.s32.totalorder %s739_s24, 0  ;;  %p41_p6 = scmp.eq.s32.totalorder %s38_s28, 0 }
   0xc   : > { %p772_p8 = scmp.lt.s32.totalorder %s948_s23, 2  ;;  %s1036_s6 = sand.u32 1, %s936_s20  }
   0xd   : > { %p1027_p7 = por %p57_p5, %p56_p4  ;;  %s759_s7 = sshll.u32 %s944_s22, 7 }
   0xe   : > { %s1033_s30 = scalar_select %p41_p6, %s936_s20, %s43_s26  }
   0xf   : > { %s1215_s29 = scalar_select %p1027_p7, 1, 0 }
  0x10   : > { %s743_s8 = sshll.u32 %s1036_s6, 3  ;;  %s1043_s11 = scalar_lea.hbm %s1207_s0, %s759_s7 }
  0x11   : > { %s218_s12 = scalar_lea.vmem [#allocation5], %s743_s8  ;;  %p1047_p9 = pnand %p772_p8, %p1020_p3 }
  0x12   : > { %s228_s13 = sshll.u32 %s218_s12, 4  ;;  %s215_s15 = scalar_lea.sflag [#allocation6], %s1036_s6  ;;  %s1051_s13 = int_to_ptr.vmem [resolvable:$true] %s228_s13 }
  0x13   : > { %s834_s16 = scalar_lea.hbm %s1043_s11, 128  ;;  %p836_p13 = pneg %p1047_p9 }
  0x14   : > { %p835_p12 = scmp.ne.s32.totalorder %s1043_s11, %s834_s16  ;;  %s839_s24 = scalar_lea.hbm %s1207_s0, 256 }
  0x15   : > { %p840_p2 = scmp.lt.u32.totalorder %s1043_s11, %s1207_s0  ;;  %p841_p3 = scmp.lt.u32.totalorder %s839_s24, %s834_s16 }
  0x16   : > { %p837_p0 = pnand %p836_p13, %p835_p12  ;;  %p843_p5 = scmp.lt.u32.totalorder %s834_s16, %s1043_s11 }
  0x17   : > { %p842_p4 = por %p841_p3, %p840_p2 }
  0x18   : > { %p838_p1 = pneg %p837_p0 }
  0x19   : > { %p844_p6 = por %p843_p5, %p842_p4 }
  0x1b   : > { %p845_p8 = pnand %p844_p6, %p838_p1 }
  0x1d   : > { %848 = shalt.err (!%p845_p8)
}
  0x1e   : > { %s849_s28 = scalar_lea.vmem %s1051_s13, 128  ;;  %s950_s7 = smov [#allocation5]  }
  0x1f   : > { %p850_p12 = scmp.ne.s32.totalorder %s1051_s13, %s849_s28  ;;  %s854_s8 = sshll.u32 %s950_s7, 4  ;;  %s855_s8 = int_to_ptr.vmem [resolvable:$false] %s854_s8 }
  0x20   : > { %s856_s9 = scalar_lea.vmem %s855_s8, 256  ;;  %p857_p11 = scmp.lt.s32.totalorder %s1051_s13, %s855_s8 }
  0x21   : > { %p852_p0 = pnand %p850_p12, %p836_p13  ;;  %p858_p2 = scmp.lt.s32.totalorder %s856_s9, %s849_s28 }
  0x23   : > { %p853_p10 = pneg %p852_p0  ;;  %p859_p3 = por %p858_p2, %p857_p11 }
  0x25   : > { %p860_p4 = pnand %p859_p3, %p853_p10 }
  0x27   : > { %863 = shalt.err (!%p860_p4)
}
  0x28   : > { %768 = dma.hbm_to_vmem [thread:$0]  (!%p1047_p9), %s1043_s11, 128, %s1051_s13, %s215_s15  }
  0x29   : > { %p1217_p1 = scmp.lt.s32.totalorder %s948_s23, 3  ;;  %p1218_p5 = scmp.ge.s32.totalorder %s948_s23, 1 }
  0x2a   : > { %s746_s12 = sshll.u32 %s1036_s6, 1  ;;  %s760_s16 = sshll.u32 %s944_s22, 5 }
  0x2b   : > { %p1085_p6 = pnand %p1218_p5, %p1217_p1  ;;  %s1094_s24 = scalar_lea.hbm %s1208_s1, %s760_s16 }
  0x2c   : > { %s239_s26 = scalar_lea.vmem [#allocation7], %s746_s12  ;;  %s236_s11 = scalar_lea.sflag [#allocation8], %s1036_s6 }
  0x2d   : > { %s1219_s10 = scalar_select %p1085_p6, 1, 0 }
  0x2e   : > { %s249_s27 = sshll.u32 %s239_s26, 4  ;;  %s864_s13 = scalar_lea.hbm %s1094_s24, 32  ;;  %s250_s27 = int_to_ptr.vmem [resolvable:$true] %s249_s27 }
  0x2f   : > { %p865_p10 = scmp.ne.s32.totalorder %s1094_s24, %s864_s13  ;;  %s869_s7 = scalar_lea.hbm %s1208_s1, 64 }
  0x30   : > { %p870_p12 = scmp.lt.u32.totalorder %s1094_s24, %s1208_s1  ;;  %p871_p0 = scmp.lt.u32.totalorder %s869_s7, %s864_s13 }
  0x31   : > { %p867_p11 = pnand %p865_p10, %p836_p13  ;;  %p873_p3 = scmp.lt.u32.totalorder %s864_s13, %s1094_s24 }
  0x32   : > { %p872_p2 = por %p871_p0, %p870_p12 }
  0x33   : > { %p868_p8 = pneg %p867_p11 }
  0x34   : > { %p874_p4 = por %p873_p3, %p872_p2 }
  0x36   : > { %p875_p1 = pnand %p874_p4, %p868_p8 }
  0x38   : > { %878 = shalt.err (!%p875_p1)
}
  0x39   : > { %s879_s6 = scalar_lea.vmem %s250_s27, 32  ;;  %s951_s12 = smov [#allocation7]  }
  0x3a   : > { %p880_p5 = scmp.ne.s32.totalorder %s250_s27, %s879_s6  ;;  %s884_s16 = sshll.u32 %s951_s12, 4  ;;  %s885_s16 = int_to_ptr.vmem [resolvable:$false] %s884_s16 }
  0x3b   : > { %s886_s17 = scalar_lea.vmem %s885_s16, 64  ;;  %p887_p7 = scmp.lt.s32.totalorder %s250_s27, %s885_s16 }
  0x3c   : > { %p882_p10 = pnand %p880_p5, %p836_p13  ;;  %p888_p6 = scmp.lt.s32.totalorder %s886_s17, %s879_s6 }
  0x3e   : > { %p883_p11 = pneg %p882_p10  ;;  %p889_p0 = por %p888_p6, %p887_p7 }
  0x40   : > { %p890_p12 = pnand %p889_p0, %p883_p11 }
  0x42   : > { %893 = shalt.err (!%p890_p12)
}
  0x43   : > { %771 = dma.hbm_to_vmem [thread:$0]  (!%p1047_p9), %s1094_s24, 32, %s250_s27, %s236_s11  }
  0x44   : > { %p1220_p8 = scmp.ne.s32.totalorder %s1219_s10, 0 }
  0x45   : > { %s272_s18 = sand.u32 (!%p1220_p8), 1, %s932_s19   ;;  %p1221_p13 = scmp.ne.s32.totalorder (!%p1220_p8), %s1215_s29, 0 }
  0x46   : > { %270 = sbr.rel (%p1220_p8) target bundleno = 313 (0x139), region = 32  ;;  %s750_s26 = sshll.u32 (!%p1220_p8), %s272_s18, 3 }
  0x47   : > { %s273_s13 = scalar_lea.sflag (!%p1220_p8), [#allocation6], %s272_s18  ;;  %s276_s15 = scalar_lea.vmem (!%p1220_p8), [#allocation5], %s750_s26 }
  0x4d   : > { %919 = dma.done.wait (%p1221_p13), %s273_s13, 128  }
  0x4e   : > { %921 = vsyncadd (%p1221_p13), %s273_s13, 4294967168  ;;  %s751_s28 = sshll.u32 %s272_s18, 1  ;;  %s282_s7 = scalar_lea.sflag [#allocation8], %s272_s18 }
  0x4f   : > { %s285_s14 = scalar_lea.vmem [#allocation7], %s751_s28 }
  0x50   : > { %923 = dma.done.wait (%p1221_p13), %s282_s7, 32  }
  0x51   : > { %925 = vsyncadd (%p1221_p13), %s282_s7, 4294967264  ;;  %v359_v0 = vlaneseq  ;;  %v952_v2 = vmov 0.0   ;;  %vm382_vm1 = vcmask 1043456   ;;  %v364_v3 = vld [vmem:[%s276_s15] sm:$0xff]  ;;  %v365_v19 = vld [vmem:[%s285_s14] sm:$0x3] }
  0x52   : > { %v380_v4 = vcombine.high %v364_v3, %v364_v3  ;;  %v383_v5 = vsel %vm382_vm1, %v364_v3, -inf  ;;  %p334_p7 = scmp.lt.s32.totalorder %s940_s21, 1  ;;  %vm558_vm4 = vcmask 1040384   ;;  %vm534_vm5 = vcmask 3072  }
  0x53   : > { %vm1127_vm0 = vcmp.lt.s32.totalorder %v359_v0, 256  ;;  %v384_v6 = vrot.slane %v383_v5, 4  ;;  %v1135_v12 = vshrl.u32 %v359_v0, 7  ;;  %vm564_vm6 = vcmask 0  }
  0x54   : > { %363 = vst.msk [vmem:[#allocation4] sm:$0x3] %vm1127_vm0, %v952_v2  ;;  %v390_v7 = vsel %vm382_vm1, %v380_v4, -inf  ;;  %s1232_s21 = smov (!%p334_p7, %s940_s21), 1  ;;  %v953_v4 = vmov 1966171168  }
  0x55   : > { %v385_v8 = vmax.f32 %v383_v5, %v384_v6  ;;  %v391_v9 = vrot.slane %v390_v7, 4  ;;  %v1138_v17 = vsub.s32 0, %v1135_v12  ;;  %v1141_v18 = vsub.s32 1, %v1135_v12  ;;  %s752_s29 = sshll.u32 %s1232_s21, 1  ;;  %s753_s11 = sshll.u32 %s1232_s21, 2 }
  0x56   : > { %s340_s27 = scalar_lea.vmem %s1209_s2, %s752_s29  ;;  %v502_v5 = vunpack.c.l.s4 %v953_v4  ;;  %s345_s6 = scalar_lea.vmem %s1210_s3, %s753_s11 }
  0x57   : > { %v386_v10 = vrot.slane %v385_v8, 2  ;;  %v392_v11 = vmax.f32 %v390_v7, %v391_v9  ;;  %v435_v23 = vrot.slane %v365_v19, %v1138_v17  ;;  %v439_v24 = vrot.slane %v365_v19, %v1141_v18  ;;  %v366_v63 = vld [vmem:[%s340_s27] sm:$0x3]  ;;  %s349_s17 = scalar_lea.vmem %s1211_s4, %s753_s11  ;;  %s352_s13 = scalar_lea.vmem %s1212_s5, %s1232_s21 }
  0x58   : > { %v503_v19 = vunpack.c.0.s8 %v502_v5 }
  0x59   : > { %v387_v13 = vmax.f32 %v385_v8, %v386_v10  ;;  %v393_v14 = vrot.slane %v392_v11, 2  ;;  %vm440_vm2 = vcmp.eq.s32.totalorder %v1135_v12, %v435_v23  ;;  %vm441_vm3 = vcmp.eq.s32.totalorder %v1135_v12, %v439_v24 }
  0x5a   : > { %v755_v28 = vsel %vm440_vm2, 1.0, %v952_v2  ;;  %v756_v29 = vsel %vm441_vm3, 1.0, %v952_v2 }
  0x5b   : > { %v388_v15 = vrot.slane %v387_v13, 1  ;;  %v394_v16 = vmax.f32 %v392_v11, %v393_v14  ;;  %v449_v30 = vcombine.low %v755_v28, %v756_v29  ;;  %v489_v11 = vrot.slane %v366_v63, %v1138_v17 }
  0x5d   : > { %v1143_v20 = vmax.f32 %v387_v13, %v388_v15  ;;  %v395_v21 = vrot.slane %v394_v16, 1  ;;  %v458_v31 = vmul.f32 %v449_v30, %v364_v3 }
  0x5f   : > { %v1145_v22 = vmax.f32 %v394_v16, %v395_v21  ;;  %v460_v35 = vcombine.high %v458_v31, %v458_v31  ;;  %v462_v38 = vsel %vm382_vm1, %v458_v31, 0.0  ;;  %v493_v16 = vrot.slane %v366_v63, %v1141_v18 }
  0x60   : > { %v463_v44 = vrot.slane %v462_v38, 4 }
  0x61   : > { %v399_v25 = vcombine.low %v1143_v20, %v1145_v22  ;;  %v469_v41 = vsel %vm382_vm1, %v460_v35, 0.0 }
  0x62   : > { %v470_v47 = vrot.slane %v469_v41, 4  ;;  %v464_v50 = vadd.f32 %v463_v44, %v462_v38 }
  0x63   : > { %v401_v26 = vsub.f32 %v364_v3, %v399_v25 }
  0x64   : > { %v471_v53 = vadd.f32 %v470_v47, %v469_v41  ;;  %v465_v55 = vrot.slane %v464_v50, 2 }
  0x65   : > { %v402_v27 = vmul.f32 1.442695, %v401_v26 }
  0x66   : > { %v472_v56 = vrot.slane %v471_v53, 2  ;;  %v466_v57 = vadd.f32 %v465_v55, %v464_v50 }
  0x67   : > { %824 = vpow2.f32 %v402_v27 }
  0x68   : > { %v473_v58 = vadd.f32 %v472_v56, %v471_v53  ;;  %v467_v59 = vrot.slane %v466_v57, 1 }
  0x6a   : > { %v474_v61 = vrot.slane %v473_v58, 1  ;;  %v468_v2 = vadd.f32 %v467_v59, %v466_v57 }
  0x6c   : > { %v475_v8 = vadd.f32 %v474_v61, %v473_v58 }
  0x71   : > { %v825_v32 = vpop.eup %824 }
  0x72   : > { %v405_v33 = vcombine.high %v825_v32, %v825_v32  ;;  %v407_v34 = vsel %vm382_vm1, %v825_v32, 0.0 }
  0x73   : > { %v408_v36 = vrot.slane %v407_v34, 4 }
  0x74   : > { %v414_v37 = vsel %vm382_vm1, %v405_v33, 0.0 }
  0x75   : > { %v409_v39 = vadd.f32 %v408_v36, %v407_v34  ;;  %v415_v40 = vrot.slane %v414_v37, 4  ;;  %v484_v36 = vld [vmem:[#allocation4] sm:$0x3] }
  0x77   : > { %v410_v42 = vrot.slane %v409_v39, 2  ;;  %v416_v43 = vadd.f32 %v415_v40, %v414_v37 }
  0x79   : > { %v411_v45 = vadd.f32 %v410_v42, %v409_v39  ;;  %v417_v46 = vrot.slane %v416_v43, 2 }
  0x7b   : > { %v412_v48 = vrot.slane %v411_v45, 1  ;;  %v418_v49 = vadd.f32 %v417_v46, %v416_v43 }
  0x7d   : > { %v413_v51 = vadd.f32 %v412_v48, %v411_v45  ;;  %v419_v52 = vrot.slane %v418_v49, 1 }
  0x7f   : > { %v420_v54 = vadd.f32 %v419_v52, %v418_v49  ;;  %826 = vrcp.f32 %v413_v51 }
  0x80   : > { %828 = vlog2.f32 %v413_v51 }
  0x81   : > { %830 = vrcp.f32 %v420_v54 }
  0x82   : > { %832 = vlog2.f32 %v420_v54 }
  0x89   : > { %v827_v60 = vpop.eup %826 }
  0x8a   : > { %v829_v62 = vpop.eup %828 }
  0x8b   : > { %v831_v0 = vpop.eup %830  ;;  %v477_v3 = vmul.f32 0.6931472, %v829_v62 }
  0x8c   : > { %v833_v6 = vpop.eup %832  ;;  %v427_v7 = vcombine.low %v827_v60, %v831_v0 }
  0x8d   : > { %v479_v9 = vmul.f32 0.6931472, %v833_v6  ;;  %v480_v10 = vadd.f32 %v477_v3, %v1143_v20  ;;  %v506_v20 = vsub.s32 %v503_v19, %v1135_v12 }
  0x8e   : > { %v429_v13 = vmul.f32 %v825_v32, %v427_v7 }
  0x8f   : > { %v481_v14 = vadd.f32 %v479_v9, %v1145_v22  ;;  %v482_v15 = vsub.f32 %v480_v10, %v468_v2 }
  0x90   : > { %v451_v21 = vmul.f32 %v449_v30, %v429_v13  ;;  %v455_v23 = vadd.f32 %v449_v30, %v429_v13 }
  0x91   : > { %v483_v24 = vsub.f32 %v481_v14, %v475_v8  ;;  %v496_v25 = vmul.f32 %v489_v11, %v482_v15 }
  0x92   : > { %v527_v26 = vcombine.high %v451_v21, %v451_v21  ;;  %v529_v27 = vsel %vm382_vm1, %v451_v21, 0.0  ;;  %v538_v28 = vcombine.high %v455_v23, %v455_v23  ;;  %v540_v32 = vsel %vm382_vm1, %v455_v23, 0.0 }
  0x93   : > { %v497_v29 = vmul.f32 %v493_v16, %v483_v24 }
  0x94   : > { %v530_v31 = vsel %vm382_vm1, %v527_v26, 0.0  ;;  %v541_v22 = vsel %vm382_vm1, %v538_v28, 0.0 }
  0x95   : > { %v500_v33 = vcombine.low %v496_v25, %v497_v29  ;;  %v531_v34 = vadd.f32 %v530_v31, %v529_v27  ;;  %v542_v30 = vadd.f32 %v541_v22, %v540_v32 }
  0x97   : > { %v507_v35 = vrot.slane %v500_v33, %v506_v20  ;;  %532 = vadd.xlane.f32.xlu0 %v531_v34 }
  0x99   : > { %v514_v37 = vrot.slane %v507_v35, %v506_v20 }
  0x9b   : > { %v516_v38 = vadd.f32 %v514_v37, %v484_v36  ;;  %543 = vadd.xlane.f32.xlu0 %v542_v30 }
  0x9d   : > { %521 = vst.msk [vmem:[#allocation4] sm:$0x3] %vm1127_vm0, %v516_v38 }
  0xa4   : > { %v546_v12 = vld [vmem:[#allocation4] sm:$0x3] }
  0xa5   : > { %v551_v39 = vrot.slane %v546_v12, %v1138_v17  ;;  %v555_v40 = vrot.slane %v546_v12, %v1141_v18 }
  0xa7   : > { %v559_v41 = vsel %vm558_vm4, %v551_v39, 0.0  ;;  %v560_v42 = vsel %vm558_vm4, %v555_v40, 0.0 }
  0xa8   : > { %v561_v43 = vadd.f32 %v560_v42, %v559_v41 }
  0xaa   : > { %562 = vadd.xlane.f32.xlu1 %v561_v43 }
 0x124   : > { %v533_v44 = vpop.xlane.xlu0 %532 }
 0x125   : > { %535 = vst.msk [vmem:[%s345_s6] sm:$0xf] %vm534_vm5, %v533_v44 }
 0x128   : > { %v544_v1 = vpop.xlane.xlu0 %543 }
 0x129   : > { %545 = vst.msk [vmem:[%s349_s17] sm:$0xf] %vm534_vm5, %v544_v1 }
 0x137   : > { %v563_v17 = vpop.xlane.xlu1 %562 }
 0x138   : > { %565 = vst.msk [vmem:[%s352_s13] sm:$0x1] %vm564_vm6, %v563_v17 }
 0x139 PF: > { %s22_s23 = sadd.s32 1, %s948_s23   ;;  %s1224_s18 = smov %s932_s19 }
 0x13a   : > { %p19_p9 = scmp.ge.s32.totalorder %s22_s23, 4   ;;  %s1225_s19 = smov %s936_s20 }
 0x13b   : > { %s1226_s20 = smov %s1033_s30  ;;  %s1227_s21 = smov %s944_s22 }
 0x13c   : > { %s1228_s22 = smov %s1230_s25  ;;  %21 = sbr.rel (!%p19_p9) target bundleno = 6 (0x6), region = 120 }
 0x143   :  { %611 = vsyncpa [#allocation6], 1 }
 0x144   :  { %613 = vsyncpa [#allocation6 + $0x1], 1 }
 0x145   :  { %614 = vsyncpa [#allocation8], 1 }
 0x146   :  { %616 = vsyncpa [#allocation8 + $0x1], 1 }

</bundles_post_ra>
